<compile_context>
chip_gen: v6e
topology: v6e:2x2x1
jax: 0.10.0
libtpu: 0.0.40
codegen_flags: <defaults>
</compile_context>

<pallas_src>
import functools

import jax
import jax.numpy as jnp
from jax.experimental import pallas as pl
from jax.experimental.pallas import tpu as pltpu


# ---------------------------------------------------------------------------
# Kernel 1: tiled global avg/max pooling + shared MLP + sigmoid -> (B, C, 1)
# ---------------------------------------------------------------------------
def _pool_mlp_kernel(x_ref, w1_ref, b1_ref, w2_ref, b2_ref,
                     scale_ref, sum_acc, max_acc, *, hw_total):
    j = pl.program_id(1)
    nj = pl.num_programs(1)

    @pl.when(j == 0)
    def _init():
        sum_acc[...] = jnp.zeros_like(sum_acc)
        max_acc[...] = jnp.full_like(max_acc, -jnp.inf)

    x = x_ref[0]  # (C, THW) float32 tile
    sum_acc[...] += jnp.sum(x, axis=-1, keepdims=True)
    max_acc[...] = jnp.maximum(max_acc[...], jnp.max(x, axis=-1, keepdims=True))

    @pl.when(j == nj - 1)
    def _finalize():
        avg = sum_acc[...] * (1.0 / hw_total)                 # (C, 1)
        pooled = jnp.concatenate([avg, max_acc[...]], axis=-1)  # (C, 2)

        # Shared MLP applied to both pooled columns at once (once per batch
        # element, off the per-tile streaming path).
        h = jnp.dot(w1_ref[...], pooled,
                    preferred_element_type=jnp.float32) + b1_ref[...]  # (hidden, 2)
        h = jnp.maximum(h, 0.0)
        att = jnp.dot(w2_ref[...], h,
                      preferred_element_type=jnp.float32) + b2_ref[...]  # (C, 2)

        att_sum = att[:, 0:1] + att[:, 1:2]                  # (C, 1)
        scale_ref[0] = jax.nn.sigmoid(att_sum)               # (C, 1)


# ---------------------------------------------------------------------------
# Kernel 2: tiled elementwise scaling  out = x * scale  (scale broadcast over HW)
# ---------------------------------------------------------------------------
def _apply_scale_kernel(x_ref, scale_ref, out_ref):
    out_ref[0] = x_ref[0] * scale_ref[0]   # (C, THW) * (C, 1)


def _pick_hw_tile(hw, max_tile=1024):
    """Largest multiple of 128 that divides HW and is <= max_tile; else HW."""
    start = min(hw, max_tile)
    cand = (start // 128) * 128
    while cand >= 128:
        if hw % cand == 0:
            return cand
        cand -= 128
    return hw  # no lane-aligned divisor (e.g. HW = 49, 196) -> full slab


def channel_gate(x, w1, b1, w2, b2):
    """x: (B, C, H, W) float32. Returns (x*scale, scale), both (B, C, H, W)."""
    B, C, H, W = x.shape
    HW = H * W
    hidden = w1.shape[0]

    x_flat = x.reshape(B, C, HW)
    b1_2d = b1.reshape(hidden, 1)
    b2_2d = b2.reshape(C, 1)

    thw = _pick_hw_tile(HW)
    n_hw = HW // thw

    # ---- Kernel 1: pooled stats + MLP + sigmoid -> per-channel scale -------
    scale = pl.pallas_call(
        functools.partial(_pool_mlp_kernel, hw_total=float(HW)),
        out_shape=jax.ShapeDtypeStruct((B, C, 1), jnp.float32),
        grid_spec=pltpu.PrefetchScalarGridSpec(
            num_scalar_prefetch=0,
            grid=(B, n_hw),
            in_specs=[
                pl.BlockSpec((1, C, thw), lambda b, j: (b, 0, j)),   # x tile
                pl.BlockSpec((hidden, C), lambda b, j: (0, 0)),      # W1 (resident)
                pl.BlockSpec((hidden, 1), lambda b, j: (0, 0)),      # b1
                pl.BlockSpec((C, hidden), lambda b, j: (0, 0)),      # W2
                pl.BlockSpec((C, 1), lambda b, j: (0, 0)),           # b2
            ],
            out_specs=pl.BlockSpec((1, C, 1), lambda b, j: (b, 0, 0)),
            scratch_shapes=[
                pltpu.VMEM((C, 1), jnp.float32),   # running sum
                pltpu.VMEM((C, 1), jnp.float32),   # running max
            ],
        ),
        compiler_params=pltpu.CompilerParams(
            dimension_semantics=("parallel", "arbitrary")),
    )(x_flat, w1, b1_2d, w2, b2_2d)

    # ---- Kernel 2: stream x once more and apply the per-channel scale ------
    out_flat = pl.pallas_call(
        _apply_scale_kernel,
        out_shape=jax.ShapeDtypeStruct((B, C, HW), jnp.float32),
        grid_spec=pltpu.PrefetchScalarGridSpec(
            num_scalar_prefetch=0,
            grid=(B, n_hw),
            in_specs=[
                pl.BlockSpec((1, C, thw), lambda b, j: (b, 0, j)),   # x tile
                pl.BlockSpec((1, C, 1), lambda b, j: (b, 0, 0)),     # scale (resident)
            ],
            out_specs=pl.BlockSpec((1, C, thw), lambda b, j: (b, 0, j)),
        ),
        compiler_params=pltpu.CompilerParams(
            dimension_semantics=("parallel", "parallel")),
    )(x_flat, scale)

    out = out_flat.reshape(B, C, H, W)
    # Broadcast in the wrapper (fuses into consumers) instead of writing a
    # redundant full-size scale tensor from the kernel.
    scale_full = jnp.broadcast_to(scale.reshape(B, C, 1, 1), (B, C, H, W))
    return out, scale_full


def _reference(x, w1, b1, w2, b2):
    """Pure-JAX reference mirroring the PyTorch forward (pool_types=['avg','max'])."""
    B, C, H, W = x.shape
    xf = x.reshape(B, C, -1)
    avg = jnp.mean(xf, axis=-1)   # (B, C)
    mx = jnp.max(xf, axis=-1)     # (B, C)

    def mlp(p):
        h = jnp.maximum(p @ w1.T + b1, 0.0)
        return h @ w2.T + b2

    att = mlp(avg) + mlp(mx)                       # (B, C)
    scale = jax.nn.sigmoid(att)[:, :, None, None]  # (B, C, 1, 1)
    scale = jnp.broadcast_to(scale, x.shape)
    return x * scale, scale


if __name__ == "__main__":
    # TODO(synk): 'lp' and 'lse' pool branches of the PyTorch module are not
    # implemented; the default pool_types=['avg', 'max'] is what is modeled.
    B, C, H, W = 2, 64, 16, 16
    reduction_ratio = 16
    hidden = C // reduction_ratio   # 4

    key = jax.random.PRNGKey(0)
    kx, k1, k2, k3, k4 = jax.random.split(key, 5)

    x = jax.random.normal(kx, (B, C, H, W), dtype=jnp.float32)
    # PyTorch Linear shapes: (out, in).
    w1 = jax.random.normal(k1, (hidden, C), dtype=jnp.float32) * 0.1
    b1 = jax.random.normal(k2, (hidden,), dtype=jnp.float32) * 0.1
    w2 = jax.random.normal(k3, (C, hidden), dtype=jnp.float32) * 0.1
    b2 = jax.random.normal(k4, (C,), dtype=jnp.float32) * 0.1

    out, scale = channel_gate(x, w1, b1, w2, b2)
    jax.block_until_ready((out, scale))

    ref_out, ref_scale = _reference(x, w1, b1, w2, b2)
    assert jnp.allclose(out, ref_out, atol=1e-5, rtol=1e-5)
    assert jnp.allclose(scale, ref_scale, atol=1e-5, rtol=1e-5)

    print("KERNEL_OK")
</pallas_src>

<mosaic_0001>
module attributes {stable_mosaic.version = 11 : i64} {
  func.func @_pool_mlp_kernel(%arg0: i32, %arg1: i32, %arg2: memref<1x64x256xf32, #tpu.memory_space<vmem>>, %arg3: memref<4x64xf32, #tpu.memory_space<vmem>>, %arg4: memref<4x1xf32, #tpu.memory_space<vmem>>, %arg5: memref<64x4xf32, #tpu.memory_space<vmem>>, %arg6: memref<64x1xf32, #tpu.memory_space<vmem>>, %arg7: memref<1x64x1xf32, #tpu.memory_space<vmem>>, %arg8: memref<64x1xf32, #tpu.memory_space<vmem>>, %arg9: memref<64x1xf32, #tpu.memory_space<vmem>>) attributes {dimension_semantics = [#tpu.dimension_semantics<parallel>, #tpu.dimension_semantics<arbitrary>], iteration_bounds = array<i64: 2, 1>, scalar_prefetch = 0 : i64, scratch_operands = 2 : i64, tpu.core_type = #tpu.core_type<tc>, window_params = [{transform_indices = @transform_0, window_bounds = array<i64: 1, 64, 256>}, {pipeline_mode = #tpu.pipeline_mode<synchronous>, transform_indices = @transform_1, window_bounds = array<i64: 4, 64>}, {pipeline_mode = #tpu.pipeline_mode<synchronous>, transform_indices = @transform_2, window_bounds = array<i64: 4, 1>}, {pipeline_mode = #tpu.pipeline_mode<synchronous>, transform_indices = @transform_3, window_bounds = array<i64: 64, 4>}, {pipeline_mode = #tpu.pipeline_mode<synchronous>, transform_indices = @transform_4, window_bounds = array<i64: 64, 1>}, {transform_indices = @transform_5, window_bounds = array<i64: 1, 64, 1>}]} {
    %c0_i32 = arith.constant 0 : i32
    %0 = arith.cmpi eq, %arg1, %c0_i32 : i32
    %1 = arith.extui %0 : i1 to i32
    %c0_i32_0 = arith.constant 0 : i32
    %2 = arith.cmpi ne, %1, %c0_i32_0 : i32
    scf.if %2 {
      %cst_14 = arith.constant 0.000000e+00 : f32
      %18 = vector.broadcast %cst_14 : f32 to vector<64x1xf32>
      %c0_15 = arith.constant 0 : index
      %c0_16 = arith.constant 0 : index
      %19 = vector.load %arg8[%c0_15, %c0_16] : memref<64x1xf32, #tpu.memory_space<vmem>>, vector<64x1xf32>
      tpu.vector_store %arg8[%c0_15, %c0_16], %18 {strides = array<i32>} : memref<64x1xf32, #tpu.memory_space<vmem>>, vector<64x1xf32>,
      %cst_17 = arith.constant 0xFF800000 : f32
      %20 = vector.broadcast %cst_17 : f32 to vector<64x1xf32>
      %c0_18 = arith.constant 0 : index
      %c0_19 = arith.constant 0 : index
      %21 = vector.load %arg9[%c0_18, %c0_19] : memref<64x1xf32, #tpu.memory_space<vmem>>, vector<64x1xf32>
      tpu.vector_store %arg9[%c0_18, %c0_19], %20 {strides = array<i32>} : memref<64x1xf32, #tpu.memory_space<vmem>>, vector<64x1xf32>,
    } else {
    }
    %c0 = arith.constant 0 : index
    %c0_1 = arith.constant 0 : index
    %c0_2 = arith.constant 0 : index
    %3 = vector.load %arg2[%c0, %c0_1, %c0_2] : memref<1x64x256xf32, #tpu.memory_space<vmem>>, vector<1x64x256xf32>
    %4 = vector.shape_cast %3 : vector<1x64x256xf32> to vector<64x256xf32>
    %c0_3 = arith.constant 0 : index
    %c0_4 = arith.constant 0 : index
    %5 = vector.load %arg8[%c0_3, %c0_4] : memref<64x1xf32, #tpu.memory_space<vmem>>, vector<64x1xf32>
    %cst = arith.constant dense<0.000000e+00> : vector<64xf32>
    %6 = vector.multi_reduction <add>, %4, %cst [1] : vector<64x256xf32> to vector<64xf32>
    %7 = vector.shape_cast %6 : vector<64xf32> to vector<64x1xf32>
    %8 = arith.addf %5, %7 : vector<64x1xf32>
    %c0_5 = arith.constant 0 : index
    %c0_6 = arith.constant 0 : index
    %9 = vector.load %arg8[%c0_5, %c0_6] : memref<64x1xf32, #tpu.memory_space<vmem>>, vector<64x1xf32>
    tpu.vector_store %arg8[%c0_5, %c0_6], %8 {strides = array<i32>} : memref<64x1xf32, #tpu.memory_space<vmem>>, vector<64x1xf32>,
    %c0_7 = arith.constant 0 : index
    %c0_8 = arith.constant 0 : index
    %10 = vector.load %arg9[%c0_7, %c0_8] : memref<64x1xf32, #tpu.memory_space<vmem>>, vector<64x1xf32>
    %cst_9 = arith.constant dense<0xFF800000> : vector<64xf32>
    %11 = vector.multi_reduction <maximumf>, %4, %cst_9 [1] : vector<64x256xf32> to vector<64xf32>
    %12 = vector.shape_cast %11 : vector<64xf32> to vector<64x1xf32>
    %13 = arith.maximumf %10, %12 : vector<64x1xf32>
    %c0_10 = arith.constant 0 : index
    %c0_11 = arith.constant 0 : index
    %14 = vector.load %arg9[%c0_10, %c0_11] : memref<64x1xf32, #tpu.memory_space<vmem>>, vector<64x1xf32>
    tpu.vector_store %arg9[%c0_10, %c0_11], %13 {strides = array<i32>} : memref<64x1xf32, #tpu.memory_space<vmem>>, vector<64x1xf32>,
    %c0_i32_12 = arith.constant 0 : i32
    %15 = arith.cmpi eq, %arg1, %c0_i32_12 : i32
    %16 = arith.extui %15 : i1 to i32
    %c0_i32_13 = arith.constant 0 : i32
    %17 = arith.cmpi ne, %16, %c0_i32_13 : i32
    scf.if %17 {
      %c0_14 = arith.constant 0 : index
      %c0_15 = arith.constant 0 : index
      %18 = vector.load %arg8[%c0_14, %c0_15] : memref<64x1xf32, #tpu.memory_space<vmem>>, vector<64x1xf32>
      %cst_16 = arith.constant 3.906250e-03 : f32
      %19 = vector.broadcast %cst_16 : f32 to vector<64x1xf32>
      %20 = arith.mulf %18, %19 : vector<64x1xf32>
      %c0_17 = arith.constant 0 : index
      %c0_18 = arith.constant 0 : index
      %21 = vector.load %arg9[%c0_17, %c0_18] : memref<64x1xf32, #tpu.memory_space<vmem>>, vector<64x1xf32>
      %22 = tpu.concatenate %20, %21 in 1 : vector<64x1xf32>, vector<64x1xf32> -> vector<64x2xf32>
      %c0_19 = arith.constant 0 : index
      %c0_20 = arith.constant 0 : index
      %23 = vector.load %arg3[%c0_19, %c0_20] : memref<4x64xf32, #tpu.memory_space<vmem>>, vector<4x64xf32>
      %cst_21 = arith.constant dense<0.000000e+00> : vector<4x2xf32>
      %24 = tpu.matmul %23, %22, %cst_21 {dimension_numbers = #tpu.dot_dimension_numbers<[1], [0], [0], [1], [0, 0, 1, 1], [], []>} : vector<4x64xf32>, vector<64x2xf32>, vector<4x2xf32> -> vector<4x2xf32>
      %c0_22 = arith.constant 0 : index
      %c0_23 = arith.constant 0 : index
      %25 = vector.load %arg4[%c0_22, %c0_23] : memref<4x1xf32, #tpu.memory_space<vmem>>, vector<4x1xf32>
      %26 = vector.broadcast %25 : vector<4x1xf32> to vector<4x2xf32>
      %27 = arith.addf %24, %26 : vector<4x2xf32>
      %cst_24 = arith.constant 0.000000e+00 : f32
      %28 = vector.broadcast %cst_24 : f32 to vector<4x2xf32>
      %29 = arith.maximumf %27, %28 : vector<4x2xf32>
      %c0_25 = arith.constant 0 : index
      %c0_26 = arith.constant 0 : index
      %30 = vector.load %arg5[%c0_25, %c0_26] : memref<64x4xf32, #tpu.memory_space<vmem>>, vector<64x4xf32>
      %cst_27 = arith.constant dense<0.000000e+00> : vector<64x2xf32>
      %31 = tpu.matmul %30, %29, %cst_27 {dimension_numbers = #tpu.dot_dimension_numbers<[1], [0], [0], [1], [0, 0, 1, 1], [], []>} : vector<64x4xf32>, vector<4x2xf32>, vector<64x2xf32> -> vector<64x2xf32>
      %c0_28 = arith.constant 0 : index
      %c0_29 = arith.constant 0 : index
      %32 = vector.load %arg6[%c0_28, %c0_29] : memref<64x1xf32, #tpu.memory_space<vmem>>, vector<64x1xf32>
      %33 = vector.broadcast %32 : vector<64x1xf32> to vector<64x2xf32>
      %34 = arith.addf %31, %33 : vector<64x2xf32>
      %35 = vector.extract_strided_slice %34 {offsets = [0, 0], sizes = [64, 1], strides = [1, 1]} : vector<64x2xf32> to vector<64x1xf32>
      %36 = vector.extract_strided_slice %34 {offsets = [0, 1], sizes = [64, 1], strides = [1, 1]} : vector<64x2xf32> to vector<64x1xf32>
      %37 = arith.addf %35, %36 : vector<64x1xf32>
      %38 = arith.negf %37 : vector<64x1xf32>
      %39 = math.exp %38 : vector<64x1xf32>
      %cst_30 = arith.constant 1.000000e+00 : f32
      %40 = vector.broadcast %cst_30 : f32 to vector<64x1xf32>
      %41 = arith.addf %40, %39 : vector<64x1xf32>
      %42 = arith.divf %40, %41 : vector<64x1xf32>
      %c0_31 = arith.constant 0 : index
      %c0_32 = arith.constant 0 : index
      %c0_33 = arith.constant 0 : index
      %43 = vector.load %arg7[%c0_31, %c0_32, %c0_33] : memref<1x64x1xf32, #tpu.memory_space<vmem>>, vector<1x64x1xf32>
      %44 = vector.shape_cast %43 : vector<1x64x1xf32> to vector<64x1xf32>
      %45 = vector.shape_cast %42 : vector<64x1xf32> to vector<1x64x1xf32>
      tpu.vector_store %arg7[%c0_31, %c0_32, %c0_33], %45 {strides = array<i32>} : memref<1x64x1xf32, #tpu.memory_space<vmem>>, vector<1x64x1xf32>,
    } else {
    }
    return
  }
  func.func @transform_0(%arg0: i32, %arg1: i32) -> (i32, i32, i32) {
    %c0_i32 = arith.constant 0 : i32
    %c0_i32_0 = arith.constant 0 : i32
    return %arg0, %c0_i32, %arg1 : i32, i32, i32
  }
  func.func @transform_1(%arg0: i32, %arg1: i32) -> (i32, i32) {
    %c0_i32 = arith.constant 0 : i32
    %c0_i32_0 = arith.constant 0 : i32
    %c0_i32_1 = arith.constant 0 : i32
    return %c0_i32, %c0_i32_0 : i32, i32
  }
  func.func @transform_2(%arg0: i32, %arg1: i32) -> (i32, i32) {
    %c0_i32 = arith.constant 0 : i32
    %c0_i32_0 = arith.constant 0 : i32
    %c0_i32_1 = arith.constant 0 : i32
    return %c0_i32, %c0_i32_0 : i32, i32
  }
  func.func @transform_3(%arg0: i32, %arg1: i32) -> (i32, i32) {
    %c0_i32 = arith.constant 0 : i32
    %c0_i32_0 = arith.constant 0 : i32
    %c0_i32_1 = arith.constant 0 : i32
    return %c0_i32, %c0_i32_0 : i32, i32
  }
  func.func @transform_4(%arg0: i32, %arg1: i32) -> (i32, i32) {
    %c0_i32 = arith.constant 0 : i32
    %c0_i32_0 = arith.constant 0 : i32
    %c0_i32_1 = arith.constant 0 : i32
    return %c0_i32, %c0_i32_0 : i32, i32
  }
  func.func @transform_5(%arg0: i32, %arg1: i32) -> (i32, i32, i32) {
    %c0_i32 = arith.constant 0 : i32
    %c0_i32_0 = arith.constant 0 : i32
    %c0_i32_1 = arith.constant 0 : i32
    return %arg0, %c0_i32, %c0_i32_0 : i32, i32, i32
  }
}

</mosaic_0001>

<bundles_post_ra>
// kernel: tpu_custom_call.1
= control target key start
LH: loop header
LB: loop body
LE: loop exit
PB: predicated region body
PF: predicated region fallthrough
CT: control target
= control target key end

     0   :  { %10 = vsyncpa [#allocation5], 0  ;;  %s1458_s0 = inlined_call_operand.hbm [shape: f32[2,64,256], index: 0, kind: input, shape index: {}]   ;;  %s1459_s1 = inlined_call_operand.vmem [shape: f32[4,64], index: 1, kind: input, shape index: {}]   ;;  %s1460_s2 = inlined_call_operand.vmem [shape: f32[4,1], index: 2, kind: input, shape index: {}]   ;;  %s1461_s3 = inlined_call_operand.vmem [shape: f32[64,4], index: 3, kind: input, shape index: {}]   ;;  %s1462_s4 = inlined_call_operand.vmem [shape: f32[64,1], index: 4, kind: input, shape index: {}]   ;;  %s1463_s5 = inlined_call_operand.vmem [shape: f32[2,64,1], index: 5, kind: output, shape index: {}]  }
   0x1   :  { %12 = vsyncpa [#allocation5 + $0x1], 0  ;;  %s1209_s18 = smov 0   ;;  %s1211_s19 = smov 0  }
   0x2   :  { %s1213_s20 = smov 0   ;;  %s1215_s21 = smov 0  }
   0x3   :  { %s1217_s22 = smov 0   ;;  %s1219_s23 = smov 0  }
   0x4 LB: > { %s909_s24 = sadd.s32 4294967295, %s1168_s23   ;;  %s30_s25 = sadd.s32 1, %s1164_s22  ;;  %s1168_s23 = sphi %s1219_s23, %s18_s23   ;;  %s1164_s22 = sphi %s1217_s22, %s1471_s22   ;;  %s1160_s21 = sphi %s1215_s21, %s1470_s21   ;;  %s1156_s20 = sphi %s1213_s20, %s1469_s20   ;;  %s1152_s19 = sphi %s1211_s19, %s1468_s19   ;;  %s1148_s18 = sphi %s1209_s18, %s1467_s18  }
   0x5   : > { %p32_p0 = scmp.ge.s32.totalorder %s30_s25, 2  ;;  %s39_s26 = sadd.s32 1, %s1156_s20 }
   0x6   : > { %p46_p1 = scmp.ne.s32.totalorder %s1156_s20, %s1152_s19  ;;  %p47_p2 = scmp.eq.s32.totalorder %s1168_s23, 0 }
   0x7   : > { %s1473_s25 = smov (%p32_p0, %s30_s25), 0  ;;  %p52_p4 = scmp.ne.s32.totalorder %s1152_s19, %s1148_s18 }
   0x8   : > { %p1245_p3 = por %p47_p2, %p46_p1  ;;  %s34_s28 = ssub.s32 %s1164_s22, %s1473_s25 }
   0x9   : > { %p53_p5 = scmp.eq.s32.totalorder %s909_s24, 0  ;;  %p37_p6 = scmp.eq.s32.totalorder %s34_s28, 0 }
   0xa   : > { %p999_p8 = scmp.lt.s32.totalorder %s1168_s23, 2  ;;  %s198_s6 = sand.u32 1, %s1156_s20  }
   0xb   : > { %p1252_p7 = por %p53_p5, %p52_p4  ;;  %s940_s7 = sshll.u32 %s1164_s22, 11 }
   0xc   : > { %s1258_s30 = scalar_select %p37_p6, %s1156_s20, %s39_s26  }
   0xd   : > { %s913_s8 = sshll.u32 %s198_s6, 7  ;;  %s210_s11 = scalar_lea.hbm %s1458_s0, %s940_s7 }
   0xe   : > { %s202_s12 = scalar_lea.vmem [#allocation4], %s913_s8  ;;  %p1267_p9 = pnand %p999_p8, %p1245_p3 }
   0xf   : > { %s211_s13 = sshll.u32 %s202_s12, 4  ;;  %s199_s15 = scalar_lea.sflag [#allocation5], %s198_s6  ;;  %s212_s13 = int_to_ptr.vmem [resolvable:$true] %s211_s13 }
  0x10   : > { %p1092_p10 = pneg %p1267_p9  ;;  %s1103_s16 = scalar_lea.vmem %s212_s13, 2048 }
  0x11   : > { %p1104_p11 = scmp.ne.s32.totalorder %s212_s13, %s1103_s16  ;;  %s1170_s17 = smov [#allocation4]  }
  0x12   : > { %s1108_s18 = sshll.u32 %s1170_s17, 4  ;;  %s1109_s18 = int_to_ptr.vmem [resolvable:$false] %s1108_s18 }
  0x13   : > { %p1106_p12 = pnand %p1104_p11, %p1092_p10  ;;  %s1110_s24 = scalar_lea.vmem %s1109_s18, 4096 }
  0x14   : > { %p1111_p0 = scmp.lt.s32.totalorder %s212_s13, %s1109_s18  ;;  %p1112_p1 = scmp.lt.s32.totalorder %s1110_s24, %s1103_s16 }
  0x15   : > { %p1107_p13 = pneg %p1106_p12 }
  0x16   : > { %p1113_p2 = por %p1112_p1, %p1111_p0 }
  0x18   : > { %p1114_p3 = pnand %p1113_p2, %p1107_p13 }
  0x1a   : > { %1117 = shalt.err (!%p1114_p3)
}
  0x1b   : > { %s1171_s26 = smov 256   ;;  %s1172_s27 = smov 16  }
  0x1c   : > { %998 = dma.hbm_to_vmem [thread:$0]  (!%p1267_p9), %s210_s11, 2048, %s212_s13, %s199_s15, %s1171_s26, %s1171_s26, %s1172_s27  }
  0x1d   : > { %p916_p4 = scmp.ge.s32.totalorder %s1168_s23, 1  ;;  %p219_p5 = scmp.lt.s32.totalorder %s1168_s23, 3 }
  0x1f   : > { %p220_p6 = pnand %p916_p4, %p219_p5 }
  0x20   : > { %s225_s28 = sand.u32 (!%p220_p6), 1, %s1152_s19  }
  0x21   : > { %223 = sbr.rel (%p220_p6) target bundleno = 885 (0x375), region = 40  ;;  %s917_s6 = sshll.u32 (!%p220_p6), %s225_s28, 7 }
  0x22   : > { %s226_s7 = scalar_lea.sflag (!%p220_p6), [#allocation5], %s225_s28  ;;  %s1278_s8 = scalar_lea.vmem (!%p220_p6), [#allocation4], %s917_s6 }
  0x26   : > { %1143 = dma.done.wait (%p1252_p7), %s226_s7, 2048  }
  0x27   : > { %1145 = vsyncadd (%p1252_p7), %s226_s7, 4294965248  ;;  %vm266_vm0 = vcmask 7168   ;;  %v1173_v0 = vmov -inf   ;;  %v297_v1 = vld [vmem:[%s1278_s8 + $0x70] sm:$0xff]  ;;  %v298_v2 = vld [vmem:[%s1278_s8 + $0x78] sm:$0xff]  ;;  %v1174_v33 = vmov 0.0  }
  0x28   : > { %282 = vst.msk [vmem:[#allocation3 + $0x38] sm:$0xff] %vm266_vm0, %v1173_v0  ;;  %275 = vst.msk [vmem:[#allocation3] sm:$0xff] %vm266_vm0, %v1173_v0  ;;  %v295_v3 = vld [vmem:[%s1278_s8 + $0x60] sm:$0xff]  ;;  %v377_v4 = vmax.f32 %v297_v1, %v298_v2  ;;  %v296_v5 = vld [vmem:[%s1278_s8 + $0x68] sm:$0xff]  ;;  %v328_v25 = vadd.f32 %v298_v2, %v297_v1  ;;  %960 = vmatprep.subr.mxu0 %v1174_v33  ;;  %s1175_s29 = smov 1   ;;  %vm1176_vm1 = vmmov 0  }
  0x29   : > { %276 = vst.msk [vmem:[#allocation3 + $0x8] sm:$0xff] %vm266_vm0, %v1173_v0  ;;  %277 = vst.msk [vmem:[#allocation3 + $0x10] sm:$0xff] %vm266_vm0, %v1173_v0  ;;  %v293_v6 = vld [vmem:[%s1278_s8 + $0x50] sm:$0xff]  ;;  %v294_v7 = vld [vmem:[%s1278_s8 + $0x58] sm:$0xff]  ;;  %v374_v10 = vmax.f32 %v295_v3, %v296_v5  ;;  %v325_v26 = vadd.f32 %v296_v5, %v295_v3  ;;  %976 = vmatprep.mubr.msk.f32.mxu0 %vm1176_vm1, %v1174_v33  ;;  %vm470_vm2 = vcmask 523264   ;;  %vm601_vm3 = vcmask 31744  }
  0x2a   : > { %278 = vst.msk [vmem:[#allocation3 + $0x18] sm:$0xff] %vm266_vm0, %v1173_v0  ;;  %279 = vst.msk [vmem:[#allocation3 + $0x20] sm:$0xff] %vm266_vm0, %v1173_v0  ;;  %v371_v8 = vmax.f32 %v293_v6, %v294_v7  ;;  %v291_v9 = vld [vmem:[%s1278_s8 + $0x40] sm:$0xff]  ;;  %378 = vmax.xlane.f32.xlu0 %v377_v4  ;;  %v292_v11 = vld [vmem:[%s1278_s8 + $0x48] sm:$0xff]  ;;  %v322_v27 = vadd.f32 %v294_v7, %v293_v6  ;;  %vm626_vm4 = vcmask 1043456   ;;  %s1178_s9 = smov 127  }
  0x2b   : > { %280 = vst.msk [vmem:[#allocation3 + $0x28] sm:$0xff] %vm266_vm0, %v1173_v0  ;;  %281 = vst.msk [vmem:[#allocation3 + $0x30] sm:$0xff] %vm266_vm0, %v1173_v0  ;;  %v289_v12 = vld [vmem:[%s1278_s8 + $0x30] sm:$0xff]  ;;  %v290_v13 = vld [vmem:[%s1278_s8 + $0x38] sm:$0xff]  ;;  %v368_v14 = vmax.f32 %v291_v9, %v292_v11  ;;  %v319_v28 = vadd.f32 %v292_v11, %v291_v9  ;;  %p257_p7 = scmp.lt.s32.totalorder %s1160_s21, 1 }
  0x2c   : > { %372 = vmax.xlane.f32.xlu1 %v371_v8  ;;  %v287_v15 = vld [vmem:[%s1278_s8 + $0x20] sm:$0xff]  ;;  %v288_v16 = vld [vmem:[%s1278_s8 + $0x28] sm:$0xff]  ;;  %v365_v17 = vmax.f32 %v289_v12, %v290_v13  ;;  %v285_v18 = vld [vmem:[%s1278_s8 + $0x10] sm:$0xff]  ;;  %v316_v29 = vadd.f32 %v290_v13, %v289_v12  ;;  %274 = vst.msk [vmem:[#allocation2 + $0x38] sm:$0xff] %vm266_vm0, %v1174_v33 }
  0x2d   : > { %v286_v19 = vld [vmem:[%s1278_s8 + $0x18] sm:$0xff]  ;;  %v362_v20 = vmax.f32 %v287_v15, %v288_v16  ;;  %v283_v21 = vld [vmem:[%s1278_s8] sm:$0xff]  ;;  %v284_v22 = vld [vmem:[%s1278_s8 + $0x8] sm:$0xff]  ;;  %v313_v30 = vadd.f32 %v288_v16, %v287_v15  ;;  %267 = vst.msk [vmem:[#allocation2] sm:$0xff] %vm266_vm0, %v1174_v33  ;;  %s1475_s21 = smov (!%p257_p7, %s1160_s21), 1 }
  0x2e   : > { %375 = vmax.xlane.f32.xlu0 %v374_v10  ;;  %v359_v23 = vmax.f32 %v285_v18, %v286_v19  ;;  %v356_v24 = vmax.f32 %v283_v21, %v284_v22  ;;  %v310_v31 = vadd.f32 %v286_v19, %v285_v18  ;;  %v307_v32 = vadd.f32 %v284_v22, %v283_v21  ;;  %s941_s10 = sshll.u32 %s1475_s21, 6 }
  0x2f   : > { %268 = vst.msk [vmem:[#allocation2 + $0x8] sm:$0xff] %vm266_vm0, %v1174_v33  ;;  %269 = vst.msk [vmem:[#allocation2 + $0x10] sm:$0xff] %vm266_vm0, %v1174_v33  ;;  %v355_v34 = vld [vmem:[#allocation3 + $0x38] sm:$0xff]  ;;  %v348_v54 = vld [vmem:[#allocation3] sm:$0xff]  ;;  %v1177_v10 = vmov 0   ;;  %s261_s13 = scalar_lea.vmem %s1463_s5, %s941_s10 }
  0x30   : > { %369 = vmax.xlane.f32.xlu1 %v368_v14  ;;  %270 = vst.msk [vmem:[#allocation2 + $0x18] sm:$0xff] %vm266_vm0, %v1174_v33  ;;  %271 = vst.msk [vmem:[#allocation2 + $0x20] sm:$0xff] %vm266_vm0, %v1174_v33  ;;  %v350_v47 = vld [vmem:[#allocation3 + $0x10] sm:$0xff]  ;;  %v349_v52 = vld [vmem:[#allocation3 + $0x8] sm:$0xff]  ;;  %1056 = vset.pattern.permute.xlu0 %v1177_v10 }
  0x31   : > { %272 = vst.msk [vmem:[#allocation2 + $0x28] sm:$0xff] %vm266_vm0, %v1174_v33  ;;  %273 = vst.msk [vmem:[#allocation2 + $0x30] sm:$0xff] %vm266_vm0, %v1174_v33  ;;  %v352_v41 = vld [vmem:[#allocation3 + $0x20] sm:$0xff]  ;;  %v351_v45 = vld [vmem:[#allocation3 + $0x18] sm:$0xff]  ;;  %1057 = vset.pattern.permute.xlu1 %v1177_v10 }
  0x32   : > { %366 = vmax.xlane.f32.xlu0 %v365_v17  ;;  %v353_v35 = vld [vmem:[#allocation3 + $0x28] sm:$0xff]  ;;  %v354_v39 = vld [vmem:[#allocation3 + $0x30] sm:$0xff]  ;;  %v464_v17 = vld [vmem:[%s1460_s2] sm:$0xf] }
  0x33   : > { %v306_v60 = vld [vmem:[#allocation2 + $0x38] sm:$0xff] }
  0x34   : > { %363 = vmax.xlane.f32.xlu1 %v362_v20  ;;  %v299_v22 = vld [vmem:[#allocation2] sm:$0xff] }
  0x36   : > { %360 = vmax.xlane.f32.xlu0 %v359_v23  ;;  %v301_v14 = vld [vmem:[#allocation2 + $0x10] sm:$0xff]  ;;  %v300_v20 = vld [vmem:[#allocation2 + $0x8] sm:$0xff] }
  0x37   : > { %v303_v5 = vld [vmem:[#allocation2 + $0x20] sm:$0xff]  ;;  %v302_v12 = vld [vmem:[#allocation2 + $0x18] sm:$0xff] }
  0x38   : > { %357 = vmax.xlane.f32.xlu1 %v356_v24  ;;  %v305_v61 = vld [vmem:[#allocation2 + $0x30] sm:$0xff]  ;;  %v304_v3 = vld [vmem:[#allocation2 + $0x28] sm:$0xff] }
  0x3a   : > { %329 = vadd.xlane.f32.xlu0 %v328_v25  ;;  %v555_v25 = vld [vmem:[%s1462_s4 + $0x10] sm:$0xff] }
  0x3c   : > { %326 = vadd.xlane.f32.xlu1 %v325_v26 }
  0x3e   : > { %323 = vadd.xlane.f32.xlu0 %v322_v27 }
  0x40   : > { %320 = vadd.xlane.f32.xlu1 %v319_v28 }
  0x42   : > { %317 = vadd.xlane.f32.xlu0 %v316_v29  ;;  %v557_v29 = vld [vmem:[%s1462_s4 + $0x20] sm:$0xff] }
  0x44   : > { %314 = vadd.xlane.f32.xlu1 %v313_v30  ;;  %v559_v30 = vld [vmem:[%s1462_s4 + $0x30] sm:$0xff] }
  0x46   : > { %311 = vadd.xlane.f32.xlu0 %v310_v31 }
  0x48   : > { %308 = vadd.xlane.f32.xlu1 %v307_v32 }
  0xb3   : > { %v379_v36 = vpop.xlane.xlu0 %378 }
  0xb4   : > { %v387_v37 = vmax.f32 %v355_v34, %v379_v36 }
  0xb5   : > { %v373_v38 = vpop.xlane.xlu1 %372 }
  0xb6   : > { %v385_v40 = vmax.f32 %v353_v35, %v373_v38  ;;  %395 = vst.msk [vmem:[#allocation3 + $0x38] sm:$0xff] %vm266_vm0, %v387_v37 }
  0xb7   : > { %v376_v42 = vpop.xlane.xlu0 %375 }
  0xb8   : > { %393 = vst.msk [vmem:[#allocation3 + $0x28] sm:$0xff] %vm266_vm0, %v385_v40  ;;  %v386_v43 = vmax.f32 %v354_v39, %v376_v42 }
  0xb9   : > { %v370_v44 = vpop.xlane.xlu1 %369 }
  0xba   : > { %v384_v46 = vmax.f32 %v352_v41, %v370_v44  ;;  %394 = vst.msk [vmem:[#allocation3 + $0x30] sm:$0xff] %vm266_vm0, %v386_v43 }
  0xbb   : > { %v367_v48 = vpop.xlane.xlu0 %366 }
  0xbc   : > { %392 = vst.msk [vmem:[#allocation3 + $0x20] sm:$0xff] %vm266_vm0, %v384_v46  ;;  %v383_v49 = vmax.f32 %v351_v45, %v367_v48 }
  0xbd   : > { %v364_v50 = vpop.xlane.xlu1 %363  ;;  %v422_v51 = vld [vmem:[#allocation3 + $0x38] sm:$0xff] }
  0xbe   : > { %v382_v53 = vmax.f32 %v350_v47, %v364_v50  ;;  %391 = vst.msk [vmem:[#allocation3 + $0x18] sm:$0xff] %vm266_vm0, %v383_v49  ;;  %445 = vrot.lane.b32.xlu0 %v422_v51, %s1175_s29 }
  0xbf   : > { %v361_v55 = vpop.xlane.xlu0 %360  ;;  %v420_v62 = vld [vmem:[#allocation3 + $0x28] sm:$0xff] }
  0xc0   : > { %390 = vst.msk [vmem:[#allocation3 + $0x10] sm:$0xff] %vm266_vm0, %v382_v53  ;;  %v381_v56 = vmax.f32 %v349_v52, %v361_v55 }
  0xc1   : > { %v358_v57 = vpop.xlane.xlu1 %357  ;;  %v421_v58 = vld [vmem:[#allocation3 + $0x30] sm:$0xff] }
  0xc2   : > { %v380_v59 = vmax.f32 %v348_v54, %v358_v57  ;;  %389 = vst.msk [vmem:[#allocation3 + $0x8] sm:$0xff] %vm266_vm0, %v381_v56  ;;  %443 = vrot.lane.b32.xlu1 %v421_v58, %s1175_s29 }
  0xc3   : > { %v330_v63 = vpop.xlane.xlu0 %329  ;;  %v419_v6 = vld [vmem:[#allocation3 + $0x20] sm:$0xff] }
  0xc4   : > { %388 = vst.msk [vmem:[#allocation3] sm:$0xff] %vm266_vm0, %v380_v59  ;;  %v338_v0 = vadd.f32 %v330_v63, %v306_v60  ;;  %v463_v63 = vld [vmem:[%s1459_s1] sm:$0xf] }
  0xc5   : > { %v327_v1 = vpop.xlane.xlu1 %326  ;;  %v418_v2 = vld [vmem:[#allocation3 + $0x18] sm:$0xff] }
  0xc6   : > { %v337_v4 = vadd.f32 %v327_v1, %v305_v61  ;;  %441 = vrot.lane.b32.xlu1 %v420_v62, %s1175_s29  ;;  %437 = vrot.lane.b32.xlu0 %v418_v2, %s1175_s29  ;;  %347 = vst.msk [vmem:[#allocation2 + $0x38] sm:$0xff] %vm266_vm0, %v338_v0  ;;  %v545_v1 = vld [vmem:[%s1461_s3] sm:$0xff] }
  0xc7   : > { %v324_v7 = vpop.xlane.xlu0 %323  ;;  %v417_v15 = vld [vmem:[#allocation3 + $0x10] sm:$0xff]  ;;  %981 = vmatprep.mubr.msk.f32.mxu1 %vm601_vm3, %v545_v1  ;;  %v553_v2 = vld [vmem:[%s1462_s4] sm:$0xff] }
  0xc8   : > { %346 = vst.msk [vmem:[#allocation2 + $0x30] sm:$0xff] %vm266_vm0, %v337_v4  ;;  %v336_v8 = vadd.f32 %v324_v7, %v304_v3  ;;  %v556_v3 = vld [vmem:[%s1462_s4 + $0x18] sm:$0xff]  ;;  %v558_v4 = vld [vmem:[%s1462_s4 + $0x28] sm:$0xff] }
  0xc9   : > { %v321_v9 = vpop.xlane.xlu1 %320  ;;  %v416_v11 = vld [vmem:[#allocation3 + $0x8] sm:$0xff] }
  0xca   : > { %v335_v13 = vadd.f32 %v321_v9, %v303_v5  ;;  %439 = vrot.lane.b32.xlu1 %v419_v6, %s1175_s29  ;;  %433 = vrot.lane.b32.xlu0 %v416_v11, %s1175_s29  ;;  %345 = vst.msk [vmem:[#allocation2 + $0x28] sm:$0xff] %vm266_vm0, %v336_v8  ;;  %v560_v5 = vld [vmem:[%s1462_s4 + $0x38] sm:$0xff]  ;;  %v546_v11 = vld [vmem:[%s1461_s3 + $0x8] sm:$0xff] }
  0xcb   : > { %v318_v16 = vpop.xlane.xlu0 %317  ;;  %v415_v23 = vld [vmem:[#allocation3] sm:$0xff] }
  0xcc   : > { %344 = vst.msk [vmem:[#allocation2 + $0x20] sm:$0xff] %vm266_vm0, %v335_v13  ;;  %v334_v18 = vadd.f32 %v318_v16, %v302_v12  ;;  %v547_v12 = vld [vmem:[%s1461_s3 + $0x10] sm:$0xff]  ;;  %v548_v13 = vld [vmem:[%s1461_s3 + $0x18] sm:$0xff] }
  0xcd   : > { %v315_v19 = vpop.xlane.xlu1 %314  ;;  %v406_v31 = vld [vmem:[#allocation2 + $0x38] sm:$0xff]  ;;  %v551_v16 = vld [vmem:[%s1461_s3 + $0x30] sm:$0xff] }
  0xce   : > { %v333_v21 = vadd.f32 %v315_v19, %v301_v14  ;;  %435 = vrot.lane.b32.xlu1 %v417_v15, %s1175_s29  ;;  %343 = vst.msk [vmem:[#allocation2 + $0x18] sm:$0xff] %vm266_vm0, %v334_v18  ;;  %467 = vperm.xlu0 %1056, %v464_v17   ;;  %v414_v32 = vmul.f32 0.00390625, %v406_v31  ;;  %v549_v14 = vld [vmem:[%s1461_s3 + $0x20] sm:$0xff]  ;;  %v550_v15 = vld [vmem:[%s1461_s3 + $0x28] sm:$0xff]  ;;  %v552_v17 = vld [vmem:[%s1461_s3 + $0x38] sm:$0xff] }
  0xcf   : > { %v312_v24 = vpop.xlane.xlu0 %311  ;;  %v405_v35 = vld [vmem:[#allocation2 + $0x30] sm:$0xff] }
  0xd0   : > { %342 = vst.msk [vmem:[#allocation2 + $0x10] sm:$0xff] %vm266_vm0, %v333_v21  ;;  %v332_v26 = vadd.f32 %v312_v24, %v300_v20  ;;  %v413_v37 = vmul.f32 0.00390625, %v405_v35 }
  0xd1   : > { %v309_v27 = vpop.xlane.xlu1 %308  ;;  %v404_v39 = vld [vmem:[#allocation2 + $0x28] sm:$0xff] }
  0xd2   : > { %v331_v28 = vadd.f32 %v309_v27, %v299_v22  ;;  %431 = vrot.lane.b32.xlu1 %v415_v23, %s1175_s29  ;;  %341 = vst.msk [vmem:[#allocation2 + $0x8] sm:$0xff] %vm266_vm0, %v332_v26  ;;  %573 = vperm.xlu0 %1056, %v555_v25   ;;  %v412_v41 = vmul.f32 0.00390625, %v404_v39 }
  0xd3   : > { %v403_v43 = vld [vmem:[#allocation2 + $0x20] sm:$0xff] }
  0xd4   : > { %340 = vst.msk [vmem:[#allocation2] sm:$0xff] %vm266_vm0, %v331_v28  ;;  %v411_v47 = vmul.f32 0.00390625, %v403_v43 }
  0xd5   : > { %v402_v44 = vld [vmem:[#allocation2 + $0x18] sm:$0xff] }
  0xd6   : > { %583 = vperm.xlu0 %1056, %v557_v29   ;;  %v410_v48 = vmul.f32 0.00390625, %v402_v44  ;;  %563 = vperm.xlu1 %1057, %v553_v2  }
  0xd7   : > { %v401_v50 = vld [vmem:[#allocation2 + $0x10] sm:$0xff] }
  0xd8   : > { %v409_v54 = vmul.f32 0.00390625, %v401_v50 }
  0xd9   : > { %v400_v51 = vld [vmem:[#allocation2 + $0x8] sm:$0xff] }
  0xda   : > { %593 = vperm.xlu0 %1056, %v559_v30   ;;  %v408_v55 = vmul.f32 0.00390625, %v400_v51 }
  0xdb   : > { %v399_v58 = vld [vmem:[#allocation2] sm:$0xff] }
  0xdc   : > { %v407_v61 = vmul.f32 0.00390625, %v399_v58 }
 0x130   : > { %v446_v34 = vpop.permute.xlu0 %445 }
 0x131   : > { %v462_v36 = vsel %vm266_vm0, %v414_v32, %v446_v34 }
 0x132   : > { %961 = vmatpush3.msra.mxu0 %v462_v36 }
 0x133   : > { %962 = vmatprep.subr.mxu0 %v1174_v33 }
 0x134   : > { %v444_v38 = vpop.permute.xlu1 %443 }
 0x135   : > { %v461_v40 = vsel %vm266_vm0, %v413_v37, %v444_v38 }
 0x136   : > { %963 = vmatpush3.msra.mxu0 %v461_v40 }
 0x137   : > { %964 = vmatprep.subr.mxu0 %v1174_v33 }
 0x138   : > { %v442_v42 = vpop.permute.xlu1 %441  ;;  %v438_v46 = vpop.permute.xlu0 %437 }
 0x139   : > { %v460_v45 = vsel %vm266_vm0, %v412_v41, %v442_v42  ;;  %v458_v53 = vsel %vm266_vm0, %v410_v48, %v438_v46 }
 0x13a   : > { %965 = vmatpush3.msra.mxu0 %v460_v45 }
 0x13b   : > { %966 = vmatprep.subr.mxu0 %v1174_v33 }
 0x13c   : > { %v440_v49 = vpop.permute.xlu1 %439  ;;  %v434_v56 = vpop.permute.xlu0 %433 }
 0x13d   : > { %v459_v52 = vsel %vm266_vm0, %v411_v47, %v440_v49  ;;  %v456_v60 = vsel %vm266_vm0, %v408_v55, %v434_v56 }
 0x13e   : > { %967 = vmatpush3.msra.mxu0 %v459_v52 }
 0x13f   : > { %968 = vmatprep.subr.mxu0 %v1174_v33 }
 0x140   : > { %v436_v57 = vpop.permute.xlu1 %435  ;;  %969 = vmatpush3.msra.mxu0 %v458_v53 }
 0x141   : > { %970 = vmatprep.subr.mxu0 %v1174_v33  ;;  %v457_v59 = vsel %vm266_vm0, %v409_v54, %v436_v57 }
 0x142   : > { %971 = vmatpush3.msra.mxu0 %v457_v59 }
 0x143   : > { %972 = vmatprep.subr.mxu0 %v1174_v33 }
 0x144   : > { %v432_v62 = vpop.permute.xlu1 %431  ;;  %973 = vmatpush3.msra.mxu0 %v456_v60 }
 0x145   : > { %974 = vmatprep.subr.mxu0 %v1174_v33  ;;  %v455_v0 = vsel %vm266_vm0, %v407_v61, %v432_v62  ;;  %v554_v33 = vld [vmem:[%s1462_s4 + $0x8] sm:$0xff] }
 0x146   : > { %975 = vmatpush3.msra.mxu0 %v455_v0  ;;  %568 = vperm.xlu1 %1057, %v554_v33  }
 0x147   : > { %977 = vmatmul.mubr.msk.f32.vlgmr.msra.gmra.mxu0 %vm470_vm2, %v463_v63 }
 0x149   : > { %v468_v6 = vpop.permute.xlu0 %467 }
 0x14a   : > { %578 = vperm.xlu1 %1057, %v556_v3  }
 0x14d   : > { %v574_v23 = vpop.permute.xlu0 %573 }
 0x14e   : > { %588 = vperm.xlu1 %1057, %v558_v4  }
 0x151   : > { %v564_v18 = vpop.permute.xlu1 %563  ;;  %v584_v31 = vpop.permute.xlu0 %583 }
 0x152   : > { %598 = vperm.xlu1 %1057, %v560_v5  }
 0x155   : > { %v594_v40 = vpop.permute.xlu0 %593 }
 0x1c1   : > { %v569_v19 = vpop.permute.xlu1 %568 }
 0x1c5   : > { %v579_v20 = vpop.permute.xlu1 %578 }
 0x1c9   : > { %v589_v28 = vpop.permute.xlu1 %588 }
 0x1cd   : > { %v599_v37 = vpop.permute.xlu1 %598 }
 0x207   : > { %v540_v7 = vpop.f32.mrf.mxu0 }
 0x208   : > { %v541_v8 = vadd.f32 %v540_v7, %v468_v6 }
 0x209   : > { %v978_v9 = vpop.f32.mrf.mxu0 }
 0x20a   : > { %v544_v10 = vmax.f32 %v541_v8, 0.0 }
 0x20c   : > { %979 = vmatprep.subr.msk.mxu1 %vm626_vm4, %v544_v10 }
 0x20d   : > { %980 = vmatpush3.msk.msra.mxu1 %vm626_vm4, %v544_v10 }
 0x20e   : > { %982 = vmatmul.mubr.msk.f32.vlgmr.msra.gmra.mxu1 %vm601_vm3, %v546_v11 }
 0x20f   : > { %984 = vmatprep.mubr.msk.f32.mxu1 %vm601_vm3, %v547_v12 }
 0x212   : > { %985 = vmatmul.mubr.msk.f32.gmra.mxu1 %vm601_vm3, %v548_v13 }
 0x213   : > { %987 = vmatprep.mubr.msk.f32.mxu1 %vm601_vm3, %v549_v14 }
 0x216   : > { %988 = vmatmul.mubr.msk.f32.gmra.mxu1 %vm601_vm3, %v550_v15 }
 0x217   : > { %990 = vmatprep.mubr.msk.f32.mxu1 %vm601_vm3, %v551_v16 }
 0x21a   : > { %991 = vmatmul.mubr.msk.f32.gmra.mxu1 %vm601_vm3, %v552_v17 }
 0x2ce   : > { %v983_v21 = vpop.f32.mrf.mxu1 }
 0x2cf   : > { %v702_v22 = vadd.f32 %v983_v21, %v569_v19 }
 0x2d0   : > { %v696_v24 = vpop.f32.mrf.mxu1 }
 0x2d1   : > { %v697_v25 = vadd.f32 %v696_v24, %v564_v18  ;;  %745 = vrot.lane.b32.xlu1 %v702_v22, %s1178_s9 }
 0x2d2   : > { %v986_v26 = vpop.f32.mrf.mxu1 }
 0x2d3   : > { %v712_v27 = vadd.f32 %v986_v26, %v579_v20  ;;  %743 = vrot.lane.b32.xlu0 %v697_v25, %s1178_s9 }
 0x2d4   : > { %v706_v29 = vpop.f32.mrf.mxu1 }
 0x2d5   : > { %v707_v30 = vadd.f32 %v706_v29, %v574_v23  ;;  %749 = vrot.lane.b32.xlu1 %v712_v27, %s1178_s9 }
 0x2d6   : > { %v989_v32 = vpop.f32.mrf.mxu1 }
 0x2d7   : > { %v722_v34 = vadd.f32 %v989_v32, %v589_v28  ;;  %747 = vrot.lane.b32.xlu0 %v707_v30, %s1178_s9 }
 0x2d8   : > { %v716_v35 = vpop.f32.mrf.mxu1 }
 0x2d9   : > { %v717_v36 = vadd.f32 %v716_v35, %v584_v31  ;;  %753 = vrot.lane.b32.xlu1 %v722_v34, %s1178_s9 }
 0x2da   : > { %v992_v38 = vpop.f32.mrf.mxu1 }
 0x2db   : > { %v732_v39 = vadd.f32 %v992_v38, %v599_v37  ;;  %751 = vrot.lane.b32.xlu0 %v717_v36, %s1178_s9 }
 0x2dc   : > { %v726_v41 = vpop.f32.mrf.mxu1 }
 0x2dd   : > { %v727_v42 = vadd.f32 %v726_v41, %v594_v40  ;;  %757 = vrot.lane.b32.xlu1 %v732_v39, %s1178_s9 }
 0x2df   : > { %755 = vrot.lane.b32.xlu0 %v727_v42, %s1178_s9 }
 0x343   : > { %v746_v43 = vpop.permute.xlu1 %745 }
 0x344   : > { %v768_v44 = vadd.f32 %v746_v43, %v702_v22 }
 0x345   : > { %v744_v45 = vpop.permute.xlu0 %743 }
 0x346   : > { %v931_v46 = vmul.f32 -1.442695, %v768_v44  ;;  %v767_v47 = vadd.f32 %v744_v45, %v697_v25 }
 0x347   : > { %v750_v48 = vpop.permute.xlu1 %749 }
 0x348   : > { %1058 = vpow2.f32 %v931_v46  ;;  %v930_v49 = vmul.f32 -1.442695, %v767_v47  ;;  %v770_v50 = vadd.f32 %v750_v48, %v712_v27 }
 0x349   : > { %v748_v51 = vpop.permute.xlu0 %747 }
 0x34a   : > { %1060 = vpow2.f32 %v930_v49  ;;  %v933_v52 = vmul.f32 -1.442695, %v770_v50  ;;  %v769_v53 = vadd.f32 %v748_v51, %v707_v30 }
 0x34b   : > { %v754_v54 = vpop.permute.xlu1 %753 }
 0x34c   : > { %1062 = vpow2.f32 %v933_v52  ;;  %v932_v55 = vmul.f32 -1.442695, %v769_v53  ;;  %v772_v56 = vadd.f32 %v754_v54, %v722_v34 }
 0x34d   : > { %v752_v57 = vpop.permute.xlu0 %751 }
 0x34e   : > { %1064 = vpow2.f32 %v932_v55  ;;  %v935_v58 = vmul.f32 -1.442695, %v772_v56  ;;  %v771_v59 = vadd.f32 %v752_v57, %v717_v36 }
 0x34f   : > { %v758_v60 = vpop.permute.xlu1 %757 }
 0x350   : > { %1066 = vpow2.f32 %v935_v58  ;;  %v934_v61 = vmul.f32 -1.442695, %v771_v59  ;;  %v774_v62 = vadd.f32 %v758_v60, %v732_v39 }
 0x351   : > { %v756_v63 = vpop.permute.xlu0 %755 }
 0x352   : > { %1068 = vpow2.f32 %v934_v61  ;;  %v937_v0 = vmul.f32 -1.442695, %v774_v62  ;;  %v773_v1 = vadd.f32 %v756_v63, %v727_v42 }
 0x354   : > { %1070 = vpow2.f32 %v937_v0  ;;  %v936_v2 = vmul.f32 -1.442695, %v773_v1 }
 0x355   : > { %v1059_v33 = vpop.eup %1058 }
 0x356   : > { %v800_v3 = vadd.f32 1.0, %v1059_v33  ;;  %1072 = vpow2.f32 %v936_v2 }
 0x357   : > { %v1061_v4 = vpop.eup %1060 }
 0x358   : > { %1074 = vrcp.f32 %v800_v3  ;;  %v799_v5 = vadd.f32 1.0, %v1061_v4 }
 0x359   : > { %v1063_v6 = vpop.eup %1062 }
 0x35a   : > { %1076 = vrcp.f32 %v799_v5  ;;  %v802_v7 = vadd.f32 1.0, %v1063_v6 }
 0x35b   : > { %v1065_v8 = vpop.eup %1064 }
 0x35c   : > { %1078 = vrcp.f32 %v802_v7  ;;  %v801_v9 = vadd.f32 1.0, %v1065_v8 }
 0x35d   : > { %v1067_v10 = vpop.eup %1066 }
 0x35e   : > { %1080 = vrcp.f32 %v801_v9  ;;  %v804_v11 = vadd.f32 1.0, %v1067_v10 }
 0x35f   : > { %v1069_v12 = vpop.eup %1068 }
 0x360   : > { %1082 = vrcp.f32 %v804_v11  ;;  %v803_v13 = vadd.f32 1.0, %v1069_v12 }
 0x361   : > { %v1071_v14 = vpop.eup %1070 }
 0x362   : > { %1084 = vrcp.f32 %v803_v13  ;;  %v806_v15 = vadd.f32 1.0, %v1071_v14 }
 0x363   : > { %v1073_v16 = vpop.eup %1072 }
 0x364   : > { %1086 = vrcp.f32 %v806_v15  ;;  %v805_v17 = vadd.f32 1.0, %v1073_v16 }
 0x365   : > { %v1075_v18 = vpop.eup %1074 }
 0x366   : > { %824 = vst.msk [vmem:[%s261_s13 + $0x8] sm:$0xff] %vm266_vm0, %v1075_v18  ;;  %1088 = vrcp.f32 %v805_v17 }
 0x367   : > { %v1077_v19 = vpop.eup %1076 }
 0x368   : > { %823 = vst.msk [vmem:[%s261_s13] sm:$0xff] %vm266_vm0, %v1077_v19 }
 0x369   : > { %v1079_v20 = vpop.eup %1078 }
 0x36a   : > { %826 = vst.msk [vmem:[%s261_s13 + $0x18] sm:$0xff] %vm266_vm0, %v1079_v20 }
 0x36b   : > { %v1081_v21 = vpop.eup %1080 }
 0x36c   : > { %825 = vst.msk [vmem:[%s261_s13 + $0x10] sm:$0xff] %vm266_vm0, %v1081_v21 }
 0x36d   : > { %v1083_v22 = vpop.eup %1082 }
 0x36e   : > { %828 = vst.msk [vmem:[%s261_s13 + $0x28] sm:$0xff] %vm266_vm0, %v1083_v22 }
 0x36f   : > { %v1085_v23 = vpop.eup %1084 }
 0x370   : > { %827 = vst.msk [vmem:[%s261_s13 + $0x20] sm:$0xff] %vm266_vm0, %v1085_v23 }
 0x371   : > { %v1087_v24 = vpop.eup %1086 }
 0x372   : > { %830 = vst.msk [vmem:[%s261_s13 + $0x38] sm:$0xff] %vm266_vm0, %v1087_v24 }
 0x373   : > { %v1089_v25 = vpop.eup %1088 }
 0x374   : > { %829 = vst.msk [vmem:[%s261_s13 + $0x30] sm:$0xff] %vm266_vm0, %v1089_v25 }
 0x375 PF: > { %s18_s23 = sadd.s32 1, %s1168_s23   ;;  %s1467_s18 = smov %s1152_s19 }
 0x376   : > { %p15_p8 = scmp.ge.s32.totalorder %s18_s23, 4   ;;  %s1468_s19 = smov %s1156_s20 }
 0x377   : > { %s1469_s20 = smov %s1258_s30  ;;  %s1470_s21 = smov %s1164_s22 }
 0x378   : > { %s1471_s22 = smov %s1473_s25  ;;  %17 = sbr.rel (!%p15_p8) target bundleno = 4 (0x4), region = 88 }
 0x37d   :  { %852 = vsyncpa [#allocation5], 1 }
 0x37e   :  { %854 = vsyncpa [#allocation5 + $0x1], 1 }

</bundles_post_ra>
